<compile_context>
chip_gen: v7x
topology: tpu7x:2x2x1
jax: 0.10.0
libtpu: 0.0.40
codegen_flags: <defaults>
</compile_context>

<pallas_src>
import functools

import jax
import jax.numpy as jnp
from jax import lax
from jax.experimental import pallas as pl
from jax.experimental.pallas import tpu as pltpu

_LANE = 128
_SUBLANE = 8
_MIN_CHUNK = _LANE * _SUBLANE  # 1024


def _vmem_capacity_bytes():
    """Best-effort VMEM capacity query; falls back to 128 MiB (v5e/v6e)."""
    try:
        info = pltpu.get_tpu_info()
        cap = getattr(info, "vmem_capacity_bytes", None)
        if cap:
            return int(cap)
    except Exception:
        pass
    return 128 * 1024 * 1024


def _default_tile_rows(vmem_cap):
    # v7x (64 MiB VMEM/TC, ~3.2 TB/s HBM) wants >=4 MiB blocks per input to
    # amortize per-step overhead; v5e/v6e (128 MiB VMEM, slower HBM) are near
    # roofline already with ~2 MiB blocks.
    if vmem_cap <= 96 * 1024 * 1024:
        return 8192  # v7x: 4 MiB f32 blocks per input
    return 4096      # v5e / v6e: 2 MiB f32 blocks per input


def _relative_loss_kernel(out_ref, tgt_ref, part_ref, *,
                          rows_valid, tile_rows, blocks_per_split):
    c = pl.program_id(0)   # parallel split (dual-TC sharding on v7x)
    j = pl.program_id(1)   # reduction over this split's row-blocks

    @pl.when(j == 0)
    def _():
        part_ref[...] = jnp.zeros_like(part_ref)

    # Upcast inside the kernel so HBM traffic stays at the input dtype width.
    o = out_ref[...].astype(jnp.float32)
    t = tgt_ref[...].astype(jnp.float32)
    d = t - o
    # Exact reciprocal (approx=True is a v7x micro-opt at ~1e-4 rel. error).
    r = d * pl.reciprocal(t, approx=False)
    sq = r * r

    row_start = (c * blocks_per_split + j) * tile_rows
    is_partial = row_start + tile_rows > rows_valid

    # Hot path: full block, no masking — pure VPU adds into the (8,128) acc.
    @pl.when(jnp.logical_not(is_partial))
    def _():
        part_ref[...] += jnp.sum(
            sq.reshape(-1, _SUBLANE, _LANE), axis=0)[None]

    # Cold path: partial / clamped trailing block — mask invalid rows
    # (where-select ignores any NaN/Inf computed from block-padding garbage).
    @pl.when(is_partial)
    def _():
        row_ids = lax.broadcasted_iota(jnp.int32, sq.shape, 0) + row_start
        sq_m = jnp.where(row_ids < rows_valid, sq, 0.0)
        part_ref[...] += jnp.sum(
            sq_m.reshape(-1, _SUBLANE, _LANE), axis=0)[None]


def relative_loss(output, target, *, tile_rows=None):
    """mean(((target - output) / target) ** 2) computed with a Pallas TPU kernel.

    Note: behavior is undefined (Inf/NaN) if `target` contains zeros, exactly
    like the PyTorch reference.
    """
    assert output.shape == target.shape
    n_elems = output.size
    assert n_elems > 0

    out_f = jnp.ravel(output)
    tgt_f = jnp.ravel(target)

    # Split into a 1024-aligned prefix (Pallas kernel) and a <1024-element tail
    # (tiny jnp sum). This avoids rewriting both full arrays through HBM on
    # unaligned inputs; only inputs smaller than one 1024-chunk get padded.
    n_aligned = (n_elems // _MIN_CHUNK) * _MIN_CHUNK
    if n_aligned == 0:
        pad = _MIN_CHUNK - n_elems
        out_f = jnp.concatenate([out_f, jnp.ones((pad,), out_f.dtype)])
        tgt_f = jnp.concatenate([tgt_f, jnp.ones((pad,), tgt_f.dtype)])
        n_aligned = _MIN_CHUNK
        tail_sum = jnp.zeros((), jnp.float32)
    elif n_aligned < n_elems:
        to = out_f[n_aligned:].astype(jnp.float32)
        tt = tgt_f[n_aligned:].astype(jnp.float32)
        rtail = (tt - to) / tt
        tail_sum = jnp.sum(rtail * rtail)
        out_f = out_f[:n_aligned]
        tgt_f = tgt_f[:n_aligned]
    else:
        tail_sum = jnp.zeros((), jnp.float32)

    rows = n_aligned // _LANE               # multiple of 8 by construction
    out_2d = out_f.reshape(rows, _LANE)     # zero-copy reshape
    tgt_2d = tgt_f.reshape(rows, _LANE)
    itemsize = jnp.dtype(out_2d.dtype).itemsize

    vmem_cap = _vmem_capacity_bytes()
    if tile_rows is None:
        tile_rows = _default_tile_rows(vmem_cap)

    # Tile sizing: cap at the array, round to a multiple of 32 when possible
    # (keeps bf16/int8 sublane packing clean), and guard against VMEM blowup.
    tr = min(int(tile_rows), rows)
    tr_cap = max(_SUBLANE, ((vmem_cap // 12) // (_LANE * 4) // 32) * 32)
    tr = min(tr, tr_cap)
    if tr >= 32:
        tr = (tr // 32) * 32
    else:
        tr = max(_SUBLANE, (tr // _SUBLANE) * _SUBLANE)

    total_blocks = pl.cdiv(rows, tr)

    # Two "parallel" splits so v7x can shard across its 2 TensorCores;
    # on single-TC chips they just run sequentially.
    num_splits = 2 if total_blocks >= 2 else 1
    bps = pl.cdiv(total_blocks, num_splits)

    def in_index_map(c, j):
        # Clamp so a possibly out-of-range trailing block of the last split
        # never issues an OOB DMA; its contribution is masked in the kernel.
        return (jnp.minimum(c * bps + j, total_blocks - 1), 0)

    # VMEM budget: 2 inputs x 2 pipeline buffers of the native-dtype block plus
    # room for the f32 elementwise-chain temporaries, capped at 3/4 of capacity.
    block_bytes = tr * _LANE * itemsize
    need = 4 * block_bytes + 6 * tr * _LANE * 4 + (2 << 20)
    vmem_limit = int(min(max(32 << 20, need), (vmem_cap * 3) // 4))

    kernel = functools.partial(
        _relative_loss_kernel,
        rows_valid=rows, tile_rows=tr, blocks_per_split=bps)

    partials = pl.pallas_call(
        kernel,
        out_shape=jax.ShapeDtypeStruct((num_splits, _SUBLANE, _LANE),
                                       jnp.float32),
        grid_spec=pltpu.PrefetchScalarGridSpec(
            num_scalar_prefetch=0,
            grid=(num_splits, bps),
            in_specs=[
                pl.BlockSpec((tr, _LANE), in_index_map),
                pl.BlockSpec((tr, _LANE), in_index_map),
            ],
            out_specs=pl.BlockSpec((1, _SUBLANE, _LANE),
                                   lambda c, j: (c, 0, 0)),
        ),
        compiler_params=pltpu.CompilerParams(
            dimension_semantics=("parallel", "arbitrary"),
            vmem_limit_bytes=vmem_limit,
        ),
    )(out_2d, tgt_2d)

    total = jnp.sum(partials) + tail_sum
    return total / jnp.float32(n_elems)


def _check(output, target, **kw):
    loss = relative_loss(output, target, **kw)
    jax.block_until_ready(loss)
    ref = jnp.mean(((target - output) / target) ** 2)
    assert jnp.allclose(loss, ref, rtol=1e-5, atol=1e-6), (loss, ref)
    return loss


if __name__ == "__main__":
    key = jax.random.PRNGKey(0)
    ks = jax.random.split(key, 8)

    # Main case: small NCHW-like tensors (aligned, zero-copy path).
    shape = (2, 4, 16, 16)
    output = jax.random.normal(ks[0], shape, dtype=jnp.float32)
    # Keep target away from zero so the relative error is well defined.
    target = jax.random.uniform(ks[1], shape, dtype=jnp.float32,
                                minval=0.5, maxval=2.0)
    _check(output, target)

    # Unaligned size -> aligned-prefix kernel + jnp tail (no big concatenate).
    shape2 = (3, 33, 17)
    out2 = jax.random.normal(ks[2], shape2, dtype=jnp.float32)
    tgt2 = jax.random.uniform(ks[3], shape2, dtype=jnp.float32,
                              minval=0.5, maxval=2.0)
    _check(out2, tgt2, tile_rows=8)

    # Odd block count -> 2-way split with a clamped (fully masked) tail block.
    shape3 = (3, 1024)
    out3 = jax.random.normal(ks[4], shape3, dtype=jnp.float32)
    tgt3 = jax.random.uniform(ks[5], shape3, dtype=jnp.float32,
                              minval=0.5, maxval=2.0)
    _check(out3, tgt3, tile_rows=8)

    # rows % tile_rows != 0 -> exercises the partial-block masked branch.
    shape4 = (5, 1024)
    out4 = jax.random.normal(ks[6], shape4, dtype=jnp.float32)
    tgt4 = jax.random.uniform(ks[7], shape4, dtype=jnp.float32,
                              minval=0.5, maxval=2.0)
    _check(out4, tgt4, tile_rows=16)

    print("KERNEL_OK")
</pallas_src>

<mosaic_0001>
module attributes {stable_mosaic.version = 11 : i64} {
  func.func @_relative_loss_kernel(%arg0: i32, %arg1: i32, %arg2: memref<16x128xf32, #tpu.memory_space<vmem>>, %arg3: memref<16x128xf32, #tpu.memory_space<vmem>>, %arg4: memref<1x8x128xf32, #tpu.memory_space<vmem>>) attributes {dimension_semantics = [#tpu.dimension_semantics<parallel>, #tpu.dimension_semantics<arbitrary>], iteration_bounds = array<i64: 1, 1>, scalar_prefetch = 0 : i64, scratch_operands = 0 : i64, tpu.core_type = #tpu.core_type<tc>, window_params = [{transform_indices = @transform_0, window_bounds = array<i64: 16, 128>}, {transform_indices = @transform_1, window_bounds = array<i64: 16, 128>}, {transform_indices = @transform_2, window_bounds = array<i64: 1, 8, 128>}]} {
    %c0_i32 = arith.constant 0 : i32
    %0 = arith.cmpi eq, %arg1, %c0_i32 : i32
    %1 = arith.extui %0 : i1 to i32
    %c0_i32_0 = arith.constant 0 : i32
    %2 = arith.cmpi ne, %1, %c0_i32_0 : i32
    scf.if %2 {
      %cst = arith.constant 0.000000e+00 : f32
      %19 = vector.broadcast %cst : f32 to vector<1x8x128xf32>
      %c0_8 = arith.constant 0 : index
      %c0_9 = arith.constant 0 : index
      %c0_10 = arith.constant 0 : index
      %20 = vector.load %arg4[%c0_8, %c0_9, %c0_10] : memref<1x8x128xf32, #tpu.memory_space<vmem>>, vector<1x8x128xf32>
      tpu.vector_store %arg4[%c0_8, %c0_9, %c0_10], %19 {strides = array<i32>} : memref<1x8x128xf32, #tpu.memory_space<vmem>>, vector<1x8x128xf32>,
    } else {
    }
    %c0 = arith.constant 0 : index
    %c0_1 = arith.constant 0 : index
    %3 = vector.load %arg2[%c0, %c0_1] : memref<16x128xf32, #tpu.memory_space<vmem>>, vector<16x128xf32>
    %c0_2 = arith.constant 0 : index
    %c0_3 = arith.constant 0 : index
    %4 = vector.load %arg3[%c0_2, %c0_3] : memref<16x128xf32, #tpu.memory_space<vmem>>, vector<16x128xf32>
    %5 = arith.subf %4, %3 : vector<16x128xf32>
    %6 = tpu.reciprocal %4 : vector<16x128xf32> -> vector<16x128xf32>
    %7 = arith.mulf %5, %6 : vector<16x128xf32>
    %8 = arith.mulf %7, %7 : vector<16x128xf32>
    %c1_i32 = arith.constant 1 : i32
    %9 = arith.muli %arg0, %c1_i32 : i32
    %10 = arith.addi %9, %arg1 : i32
    %c16_i32 = arith.constant 16 : i32
    %11 = arith.muli %10, %c16_i32 : i32
    %c16_i32_4 = arith.constant 16 : i32
    %12 = arith.addi %11, %c16_i32_4 : i32
    %c16_i32_5 = arith.constant 16 : i32
    %13 = arith.cmpi sgt, %12, %c16_i32_5 : i32
    %true = arith.constant true
    %14 = arith.xori %13, %true : i1
    %15 = arith.extui %14 : i1 to i32
    %c0_i32_6 = arith.constant 0 : i32
    %16 = arith.cmpi ne, %15, %c0_i32_6 : i32
    scf.if %16 {
      %c0_8 = arith.constant 0 : index
      %c0_9 = arith.constant 0 : index
      %c0_10 = arith.constant 0 : index
      %19 = vector.load %arg4[%c0_8, %c0_9, %c0_10] : memref<1x8x128xf32, #tpu.memory_space<vmem>>, vector<1x8x128xf32>
      %20 = vector.shape_cast %8 : vector<16x128xf32> to vector<2x8x128xf32>
      %cst = arith.constant dense<0.000000e+00> : vector<8x128xf32>
      %21 = vector.multi_reduction <add>, %20, %cst [0] : vector<2x8x128xf32> to vector<8x128xf32>
      %22 = vector.shape_cast %21 : vector<8x128xf32> to vector<1x8x128xf32>
      %23 = arith.addf %19, %22 : vector<1x8x128xf32>
      %c0_11 = arith.constant 0 : index
      %c0_12 = arith.constant 0 : index
      %c0_13 = arith.constant 0 : index
      %24 = vector.load %arg4[%c0_11, %c0_12, %c0_13] : memref<1x8x128xf32, #tpu.memory_space<vmem>>, vector<1x8x128xf32>
      tpu.vector_store %arg4[%c0_11, %c0_12, %c0_13], %23 {strides = array<i32>} : memref<1x8x128xf32, #tpu.memory_space<vmem>>, vector<1x8x128xf32>,
    } else {
    }
    %17 = arith.extui %13 : i1 to i32
    %c0_i32_7 = arith.constant 0 : i32
    %18 = arith.cmpi ne, %17, %c0_i32_7 : i32
    scf.if %18 {
      %19 = tpu.iota {dimensions = array<i32: 0>} : vector<16x128xi32>
      %20 = vector.broadcast %11 : i32 to vector<16x128xi32>
      %21 = arith.addi %19, %20 : vector<16x128xi32>
      %c16_i32_8 = arith.constant 16 : i32
      %22 = vector.broadcast %c16_i32_8 : i32 to vector<16x128xi32>
      %23 = arith.cmpi slt, %21, %22 : vector<16x128xi32>
      %cst = arith.constant 0.000000e+00 : f32
      %24 = vector.broadcast %cst : f32 to vector<16x128xf32>
      %25 = arith.select %23, %8, %24 : vector<16x128xi1>, vector<16x128xf32>
      %c0_9 = arith.constant 0 : index
      %c0_10 = arith.constant 0 : index
      %c0_11 = arith.constant 0 : index
      %26 = vector.load %arg4[%c0_9, %c0_10, %c0_11] : memref<1x8x128xf32, #tpu.memory_space<vmem>>, vector<1x8x128xf32>
      %27 = vector.shape_cast %25 : vector<16x128xf32> to vector<2x8x128xf32>
      %cst_12 = arith.constant dense<0.000000e+00> : vector<8x128xf32>
      %28 = vector.multi_reduction <add>, %27, %cst_12 [0] : vector<2x8x128xf32> to vector<8x128xf32>
      %29 = vector.shape_cast %28 : vector<8x128xf32> to vector<1x8x128xf32>
      %30 = arith.addf %26, %29 : vector<1x8x128xf32>
      %c0_13 = arith.constant 0 : index
      %c0_14 = arith.constant 0 : index
      %c0_15 = arith.constant 0 : index
      %31 = vector.load %arg4[%c0_13, %c0_14, %c0_15] : memref<1x8x128xf32, #tpu.memory_space<vmem>>, vector<1x8x128xf32>
      tpu.vector_store %arg4[%c0_13, %c0_14, %c0_15], %30 {strides = array<i32>} : memref<1x8x128xf32, #tpu.memory_space<vmem>>, vector<1x8x128xf32>,
    } else {
    }
    return
  }
  func.func @transform_0(%arg0: i32, %arg1: i32) -> (i32, i32) {
    %c1_i32 = arith.constant 1 : i32
    %0 = arith.muli %arg0, %c1_i32 : i32
    %1 = arith.addi %0, %arg1 : i32
    %c0_i32 = arith.constant 0 : i32
    %2 = arith.minsi %1, %c0_i32 : i32
    %c0_i32_0 = arith.constant 0 : i32
    %c0_i32_1 = arith.constant 0 : i32
    return %2, %c0_i32_0 : i32, i32
  }
  func.func @transform_1(%arg0: i32, %arg1: i32) -> (i32, i32) {
    %c1_i32 = arith.constant 1 : i32
    %0 = arith.muli %arg0, %c1_i32 : i32
    %1 = arith.addi %0, %arg1 : i32
    %c0_i32 = arith.constant 0 : i32
    %2 = arith.minsi %1, %c0_i32 : i32
    %c0_i32_0 = arith.constant 0 : i32
    %c0_i32_1 = arith.constant 0 : i32
    return %2, %c0_i32_0 : i32, i32
  }
  func.func @transform_2(%arg0: i32, %arg1: i32) -> (i32, i32, i32) {
    %c0_i32 = arith.constant 0 : i32
    %c0_i32_0 = arith.constant 0 : i32
    %c0_i32_1 = arith.constant 0 : i32
    return %arg0, %c0_i32, %c0_i32_0 : i32, i32, i32
  }
}

</mosaic_0001>

<bundles_post_ra>
// kernel: tpu_custom_call.1
= control target key start
LH: loop header
LB: loop body
LE: loop exit
PB: predicated region body
PF: predicated region fallthrough
CT: control target
= control target key end

     0   :  { %7 = vsyncpa [#allocation3], 0  ;;  %s264_s0 = inlined_call_operand.hbm [shape: f32[16,128], index: 0, kind: input, shape index: {}]   ;;  %s265_s1 = inlined_call_operand.hbm [shape: f32[16,128], index: 1, kind: input, shape index: {}]   ;;  %s266_s2 = inlined_call_operand.hbm [shape: f32[1,8,128], index: 2, kind: output, shape index: {}]  }
   0x1   :  { %8 = vsyncpa [#allocation6], 0 }
   0x2   :  { %9 = vsyncpa [#allocation4], 0  ;;  %s208_s9 = smov [#allocation2]   ;;  %s136_s13 = scalar_lea.hbm %s264_s0, 256 }
   0x3   :  { %s21_s10 = sshll.u32 %s208_s9, 4  ;;  %p137_p0 = scmp.ne.s32.totalorder %s264_s0, %s136_s13  ;;  %s22_s10 = int_to_ptr.vmem [resolvable:$true] %s21_s10 }
   0x4   :  { %p140_p1 = scmp.lt.u32.totalorder %s136_s13, %s264_s0 }
   0x6   :  { %p142_p2 = pnand %p140_p1, %p137_p0 }
   0x8   :  { %145 = shalt.err (!%p142_p2)
}
   0x9   :  { %s146_s18 = scalar_lea.vmem %s22_s10, 256  ;;  %p151_p4 = scmp.lt.s32.totalorder %s22_s10, %s22_s10 }
   0xa   :  { %p147_p3 = scmp.ne.s32.totalorder %s22_s10, %s146_s18  ;;  %p152_p5 = scmp.lt.s32.totalorder %s146_s18, %s146_s18 }
   0xc   :  { %p153_p6 = por %p152_p5, %p151_p4 }
   0xe   :  { %p154_p7 = pnand %p153_p6, %p147_p3 }
  0x10   :  { %157 = shalt.err (!%p154_p7)
}
  0x11   :  { %s209_s19 = smov 128   ;;  %s210_s20 = smov 8  }
  0x12   :  { %27 = dma.hbm_to_vmem [thread:$0]  %s264_s0, 256, %s22_s10, [#allocation3], %s209_s19, %s209_s19, %s210_s20  }
  0x13   :  { %s211_s23 = smov [#allocation5]   ;;  %s158_s27 = scalar_lea.hbm %s265_s1, 256 }
  0x14   :  { %s39_s24 = sshll.u32 %s211_s23, 4  ;;  %p159_p8 = scmp.ne.s32.totalorder %s265_s1, %s158_s27  ;;  %s40_s24 = int_to_ptr.vmem [resolvable:$true] %s39_s24 }
  0x15   :  { %p162_p9 = scmp.lt.u32.totalorder %s158_s27, %s265_s1 }
  0x17   :  { %p164_p10 = pnand %p162_p9, %p159_p8 }
  0x19   :  { %167 = shalt.err (!%p164_p10)
}
  0x1a   :  { %s168_s4 = scalar_lea.vmem %s40_s24, 256  ;;  %p173_p12 = scmp.lt.s32.totalorder %s40_s24, %s40_s24 }
  0x1b   :  { %p169_p11 = scmp.ne.s32.totalorder %s40_s24, %s168_s4  ;;  %p174_p13 = scmp.lt.s32.totalorder %s168_s4, %s168_s4 }
  0x1d   :  { %p175_p0 = por %p174_p13, %p173_p12 }
  0x1f   :  { %p176_p1 = pnand %p175_p0, %p169_p11 }
  0x21   :  { %179 = shalt.err (!%p176_p1)
}
  0x22   :  { %45 = dma.hbm_to_vmem [thread:$0]  %s265_s1, 256, %s40_s24, [#allocation6], %s209_s19, %s209_s19, %s210_s20  }
  0x23   :  { %202 = dma.done.wait [#allocation3], 256  }
  0x24   :  { %203 = vsyncadd [#allocation3], 4294967040 }
  0x25   :  { %204 = dma.done.wait [#allocation6], 256  }
  0x26   :  { %205 = vsyncadd [#allocation6], 4294967040  ;;  %v67_v0 = vld [vmem:[#allocation5] sm:$0xff]  ;;  %v68_v1 = vld [vmem:[#allocation5 + $0x8] sm:$0xff]  ;;  %s212_s6 = smov [#allocation7]  }
  0x27   :  { %132 = vrcp.f32 %v67_v0  ;;  %v65_v2 = vld [vmem:[#allocation2] sm:$0xff]  ;;  %v66_v3 = vld [vmem:[#allocation2 + $0x8] sm:$0xff]  ;;  %s112_s1 = sshll.u32 %s212_s6, 4  ;;  %s113_s1 = int_to_ptr.vmem [resolvable:$true] %s112_s1 }
  0x28   :  { %134 = vrcp.f32 %v68_v1  ;;  %v69_v4 = vsub.f32 %v67_v0, %v65_v2  ;;  %v70_v5 = vsub.f32 %v68_v1, %v66_v3  ;;  %s180_s7 = scalar_lea.vmem %s113_s1, 128  ;;  %p185_p3 = scmp.lt.s32.totalorder %s113_s1, %s113_s1 }
  0x29   :  { %p181_p2 = scmp.ne.s32.totalorder %s113_s1, %s180_s7  ;;  %p186_p4 = scmp.lt.s32.totalorder %s180_s7, %s180_s7 }
  0x2b   :  { %p187_p5 = por %p186_p4, %p185_p3 }
  0x2d   :  { %p188_p6 = pnand %p187_p5, %p181_p2 }
  0x31   :  { %v133_v6 = vpop.eup %132 }
  0x32   :  { %v135_v7 = vpop.eup %134  ;;  %v73_v8 = vmul.f32 %v133_v6, %v69_v4 }
  0x33   :  { %v74_v9 = vmul.f32 %v135_v7, %v70_v5 }
  0x34   :  { %v75_v10 = vmul.f32 %v73_v8, %v73_v8 }
  0x35   :  { %v76_v11 = vmul.f32 %v74_v9, %v74_v9 }
  0x37   :  { %v86_v12 = vadd.f32 %v76_v11, %v75_v10 }
  0x39   :  { %88 = vst [vmem:[#allocation7] sm:$0xff] %v86_v12 }
  0x3a   :  { %191 = shalt.err (!%p188_p6)
}
  0x3b   :  { %s192_s10 = scalar_lea.hbm %s266_s2, 128 }
  0x3c   :  { %p193_p7 = scmp.ne.s32.totalorder %s266_s2, %s192_s10  ;;  %p196_p8 = scmp.lt.u32.totalorder %s192_s10, %s266_s2 }
  0x3e   :  { %p198_p9 = pnand %p196_p8, %p193_p7 }
  0x40   :  { %201 = shalt.err (!%p198_p9)
}
  0x41   :  { %115 = dma.vmem_to_hbm [thread:$0]  %s113_s1, 128, %s266_s2, [#allocation4]  }
  0x42   :  { %206 = dma.done.wait [#allocation4], 128  }
  0x43   :  { %207 = vsyncadd [#allocation4], 4294967168 }
  0x44   :  { %119 = vsyncpa [#allocation3], 1 }
  0x45   :  { %120 = vsyncpa [#allocation6], 1 }
  0x46   :  { %121 = vsyncpa [#allocation4], 1 }

</bundles_post_ra>
